<compile_context>
chip_gen: v7x
topology: tpu7x:2x2x1
jax: 0.10.0
libtpu: 0.0.40
codegen_flags: <defaults>
</compile_context>

<pallas_src>
import functools

import jax
import jax.numpy as jnp
from jax.experimental import pallas as pl
from jax.experimental.pallas import tpu as pltpu


def _round_up(x, m):
    return (x + m - 1) // m * m


def _lightgcl_kernel(r_ref, rt_ref, eu0_ref, ei0_ref, out_u_ref, out_i_ref,
                     *, n_layers):
    """Single-invocation LightGCL propagation + mean over layers.

    r_ref   : (U, I)  bf16  normalized user->item block of the adjacency
    rt_ref  : (I, U)  bf16  its transpose (item->user)
    eu0_ref : (U, E)  f32   layer-0 user embeddings
    ei0_ref : (I, E)  f32   layer-0 item embeddings
    out_u   : (U, E)  f32   mean over (n_layers + 1) user layer embeddings
    out_i   : (I, E)  f32   mean over (n_layers + 1) item layer embeddings
    """
    r = r_ref[...]
    rt = rt_ref[...]

    eu = eu0_ref[...]
    ei = ei0_ref[...]
    sum_u = eu
    sum_i = ei

    # n_layers is a static Python int; the loop unrolls at trace time, giving
    # the scheduler full visibility to overlap the two MXU dots with the adds.
    for _ in range(n_layers):
        eu_b = eu.astype(jnp.bfloat16)
        ei_b = ei.astype(jnp.bfloat16)
        eu = jnp.dot(r, ei_b, preferred_element_type=jnp.float32)
        ei = jnp.dot(rt, eu_b, preferred_element_type=jnp.float32)
        sum_u = sum_u + eu
        sum_i = sum_i + ei

    inv = jnp.float32(1.0 / (n_layers + 1))
    out_u_ref[...] = sum_u * inv
    out_i_ref[...] = sum_i * inv


def lightgcl_mean_embeddings(r_norm, user_emb, item_emb, n_layers):
    """Mean over {ego0, A ego0, ..., A^L ego0} using only the bipartite block R.

    r_norm: (U, I) f32 — the D_u^-1/2 R D_i^-1/2 block of the normalized adjacency.
    Returns (mean_user_emb (U, E) f32, mean_item_emb (I, E) f32).
    """
    U, I = r_norm.shape
    E = user_emb.shape[1]
    assert user_emb.shape[0] == U and item_emb.shape == (I, E)
    assert n_layers >= 0

    # Pad: row dims to sublane multiples (8), embedding dim to a lane multiple
    # (128) so the output store path is lane-dense.  Padded rows/cols are zero,
    # which is exactly "no edges / no embedding mass", so propagation is exact.
    U_p = _round_up(U, 8)
    I_p = _round_up(I, 8)
    E_p = _round_up(E, 128)

    r_bf16 = jnp.zeros((U_p, I_p), jnp.bfloat16).at[:U, :I].set(
        r_norm.astype(jnp.bfloat16))
    rt_bf16 = jnp.transpose(r_bf16)  # (I_p, U_p)
    eu0 = jnp.zeros((U_p, E_p), jnp.float32).at[:U, :E].set(
        user_emb.astype(jnp.float32))
    ei0 = jnp.zeros((I_p, E_p), jnp.float32).at[:I, :E].set(
        item_emb.astype(jnp.float32))

    # Resident VMEM footprint (inputs + outputs); state the budget explicitly.
    resident_bytes = (
        r_bf16.size * 2 + rt_bf16.size * 2
        + (eu0.size + ei0.size) * 4 * 2   # inputs + outputs, f32
    )
    vmem_limit = int(min(max(4 * resident_bytes, 32 * 1024 * 1024),
                         64 * 1024 * 1024))

    kernel = functools.partial(_lightgcl_kernel, n_layers=n_layers)
    out_u, out_i = pl.pallas_call(
        kernel,
        out_shape=(
            jax.ShapeDtypeStruct((U_p, E_p), jnp.float32),
            jax.ShapeDtypeStruct((I_p, E_p), jnp.float32),
        ),
        grid=(1,),
        in_specs=[
            pl.BlockSpec((U_p, I_p), lambda i: (0, 0)),  # R
            pl.BlockSpec((I_p, U_p), lambda i: (0, 0)),  # R^T
            pl.BlockSpec((U_p, E_p), lambda i: (0, 0)),  # user ego0
            pl.BlockSpec((I_p, E_p), lambda i: (0, 0)),  # item ego0
        ],
        out_specs=(
            pl.BlockSpec((U_p, E_p), lambda i: (0, 0)),
            pl.BlockSpec((I_p, E_p), lambda i: (0, 0)),
        ),
        compiler_params=pltpu.CompilerParams(
            dimension_semantics=("arbitrary",),
            vmem_limit_bytes=vmem_limit,
        ),
    )(r_bf16, rt_bf16, eu0, ei0)

    return out_u[:U, :E], out_i[:I, :E]


def lightgcl_forward(user_emb, item_emb, r_norm, users, items, n_layers=3):
    """Mirrors LightGCLEncoder.forward(users, items)."""
    mean_u, mean_i = lightgcl_mean_embeddings(r_norm, user_emb, item_emb, n_layers)
    u_embed = jnp.take(mean_u, users.astype(jnp.int32), axis=0)
    i_embed = jnp.take(mean_i, items.astype(jnp.int32), axis=0)
    return u_embed, i_embed


# ----------------------------------------------------------------------------
# Deterministic parameter / input construction
# ----------------------------------------------------------------------------
def xavier_uniform(key, shape):
    fan_out, fan_in = shape
    bound = jnp.sqrt(6.0 / (fan_in + fan_out))
    return jax.random.uniform(key, shape, jnp.float32, -bound, bound)


def build_norm_adj(key, user_count, item_count, density=0.15):
    """Returns (dense_norm_adj (N,N), r_norm (U,I)) with D^-1/2 A D^-1/2 scaling."""
    N = user_count + item_count
    r = jax.random.uniform(key, (user_count, item_count))
    R = (r < density).astype(jnp.float32)
    A = jnp.zeros((N, N), jnp.float32)
    A = A.at[:user_count, user_count:].set(R)
    A = A.at[user_count:, :user_count].set(R.T)
    deg = A.sum(axis=1)
    d_inv_sqrt = jnp.where(deg > 0, 1.0 / jnp.sqrt(jnp.maximum(deg, 1e-12)), 0.0)
    norm_adj = A * d_inv_sqrt[:, None] * d_inv_sqrt[None, :]
    r_norm = norm_adj[:user_count, user_count:]   # the bipartite block D_u^-1/2 R D_i^-1/2
    return norm_adj, r_norm


def reference_forward(user_emb, item_emb, norm_adj, users, items, n_layers=3):
    """Pure-JAX f32 reference identical to the PyTorch semantics (dense adjacency)."""
    user_count = user_emb.shape[0]
    ego = jnp.concatenate([user_emb, item_emb], axis=0)
    all_emb = [ego]
    for _ in range(n_layers):
        ego = norm_adj @ ego
        all_emb.append(ego)
    mean_emb = jnp.stack(all_emb, axis=0).mean(axis=0)
    u = jnp.take(mean_emb[:user_count], users.astype(jnp.int32), axis=0)
    i = jnp.take(mean_emb[user_count:], items.astype(jnp.int32), axis=0)
    return u, i


if __name__ == "__main__":
    user_count, item_count, emb_size, n_layers = 24, 40, 32, 3
    batch = 8

    key = jax.random.PRNGKey(0)
    k_u, k_i, k_adj, k_users, k_items = jax.random.split(key, 5)

    user_emb = xavier_uniform(k_u, (user_count, emb_size))
    item_emb = xavier_uniform(k_i, (item_count, emb_size))
    norm_adj, r_norm = build_norm_adj(k_adj, user_count, item_count)
    # NOTE: svd_u / svd_s / svd_vt from __init__ are unused in forward(), so
    # they are not materialized here.

    users = jax.random.randint(k_users, (batch,), 0, user_count, dtype=jnp.int32)
    items = jax.random.randint(k_items, (batch,), 0, item_count, dtype=jnp.int32)

    u_embed, i_embed = lightgcl_forward(
        user_emb, item_emb, r_norm, users, items, n_layers=n_layers
    )
    jax.block_until_ready((u_embed, i_embed))

    u_ref, i_ref = reference_forward(
        user_emb, item_emb, norm_adj, users, items, n_layers=n_layers
    )
    assert u_embed.shape == (batch, emb_size) and i_embed.shape == (batch, emb_size)
    # bf16 adjacency / operands => slightly looser tolerance than pure f32.
    assert jnp.allclose(u_embed, u_ref, atol=2e-2, rtol=2e-2)
    assert jnp.allclose(i_embed, i_ref, atol=2e-2, rtol=2e-2)

    print("KERNEL_OK")
</pallas_src>

<mosaic_0001>
module attributes {stable_mosaic.version = 11 : i64} {
  func.func @_lightgcl_kernel(%arg0: i32, %arg1: memref<24x40xbf16, #tpu.memory_space<vmem>>, %arg2: memref<40x24xbf16, #tpu.memory_space<vmem>>, %arg3: memref<24x128xf32, #tpu.memory_space<vmem>>, %arg4: memref<40x128xf32, #tpu.memory_space<vmem>>, %arg5: memref<24x128xf32, #tpu.memory_space<vmem>>, %arg6: memref<40x128xf32, #tpu.memory_space<vmem>>) attributes {dimension_semantics = [#tpu.dimension_semantics<arbitrary>], iteration_bounds = array<i64: 1>, scalar_prefetch = 0 : i64, scratch_operands = 0 : i64, tpu.core_type = #tpu.core_type<tc>, window_params = [{pipeline_mode = #tpu.pipeline_mode<synchronous>, transform_indices = @transform_0, window_bounds = array<i64: 24, 40>}, {pipeline_mode = #tpu.pipeline_mode<synchronous>, transform_indices = @transform_1, window_bounds = array<i64: 40, 24>}, {pipeline_mode = #tpu.pipeline_mode<synchronous>, transform_indices = @transform_2, window_bounds = array<i64: 24, 128>}, {pipeline_mode = #tpu.pipeline_mode<synchronous>, transform_indices = @transform_3, window_bounds = array<i64: 40, 128>}, {pipeline_mode = #tpu.pipeline_mode<synchronous>, transform_indices = @transform_4, window_bounds = array<i64: 24, 128>}, {pipeline_mode = #tpu.pipeline_mode<synchronous>, transform_indices = @transform_5, window_bounds = array<i64: 40, 128>}]} {
    %c0 = arith.constant 0 : index
    %c0_0 = arith.constant 0 : index
    %0 = vector.load %arg1[%c0, %c0_0] : memref<24x40xbf16, #tpu.memory_space<vmem>>, vector<24x40xbf16>
    %c0_1 = arith.constant 0 : index
    %c0_2 = arith.constant 0 : index
    %1 = vector.load %arg2[%c0_1, %c0_2] : memref<40x24xbf16, #tpu.memory_space<vmem>>, vector<40x24xbf16>
    %c0_3 = arith.constant 0 : index
    %c0_4 = arith.constant 0 : index
    %2 = vector.load %arg3[%c0_3, %c0_4] : memref<24x128xf32, #tpu.memory_space<vmem>>, vector<24x128xf32>
    %c0_5 = arith.constant 0 : index
    %c0_6 = arith.constant 0 : index
    %3 = vector.load %arg4[%c0_5, %c0_6] : memref<40x128xf32, #tpu.memory_space<vmem>>, vector<40x128xf32>
    %4 = arith.truncf %2 : vector<24x128xf32> to vector<24x128xbf16>
    %5 = arith.truncf %3 : vector<40x128xf32> to vector<40x128xbf16>
    %cst = arith.constant dense<0.000000e+00> : vector<24x128xf32>
    %6 = tpu.matmul %0, %5, %cst {dimension_numbers = #tpu.dot_dimension_numbers<[1], [0], [0], [1], [0, 0, 1, 1], [], []>} : vector<24x40xbf16>, vector<40x128xbf16>, vector<24x128xf32> -> vector<24x128xf32>
    %cst_7 = arith.constant dense<0.000000e+00> : vector<40x128xf32>
    %7 = tpu.matmul %1, %4, %cst_7 {dimension_numbers = #tpu.dot_dimension_numbers<[1], [0], [0], [1], [0, 0, 1, 1], [], []>} : vector<40x24xbf16>, vector<24x128xbf16>, vector<40x128xf32> -> vector<40x128xf32>
    %8 = arith.addf %2, %6 : vector<24x128xf32>
    %9 = arith.addf %3, %7 : vector<40x128xf32>
    %10 = arith.truncf %6 : vector<24x128xf32> to vector<24x128xbf16>
    %11 = arith.truncf %7 : vector<40x128xf32> to vector<40x128xbf16>
    %cst_8 = arith.constant dense<0.000000e+00> : vector<24x128xf32>
    %12 = tpu.matmul %0, %11, %cst_8 {dimension_numbers = #tpu.dot_dimension_numbers<[1], [0], [0], [1], [0, 0, 1, 1], [], []>} : vector<24x40xbf16>, vector<40x128xbf16>, vector<24x128xf32> -> vector<24x128xf32>
    %cst_9 = arith.constant dense<0.000000e+00> : vector<40x128xf32>
    %13 = tpu.matmul %1, %10, %cst_9 {dimension_numbers = #tpu.dot_dimension_numbers<[1], [0], [0], [1], [0, 0, 1, 1], [], []>} : vector<40x24xbf16>, vector<24x128xbf16>, vector<40x128xf32> -> vector<40x128xf32>
    %14 = arith.addf %8, %12 : vector<24x128xf32>
    %15 = arith.addf %9, %13 : vector<40x128xf32>
    %16 = arith.truncf %12 : vector<24x128xf32> to vector<24x128xbf16>
    %17 = arith.truncf %13 : vector<40x128xf32> to vector<40x128xbf16>
    %cst_10 = arith.constant dense<0.000000e+00> : vector<24x128xf32>
    %18 = tpu.matmul %0, %17, %cst_10 {dimension_numbers = #tpu.dot_dimension_numbers<[1], [0], [0], [1], [0, 0, 1, 1], [], []>} : vector<24x40xbf16>, vector<40x128xbf16>, vector<24x128xf32> -> vector<24x128xf32>
    %cst_11 = arith.constant dense<0.000000e+00> : vector<40x128xf32>
    %19 = tpu.matmul %1, %16, %cst_11 {dimension_numbers = #tpu.dot_dimension_numbers<[1], [0], [0], [1], [0, 0, 1, 1], [], []>} : vector<40x24xbf16>, vector<24x128xbf16>, vector<40x128xf32> -> vector<40x128xf32>
    %20 = arith.addf %14, %18 : vector<24x128xf32>
    %21 = arith.addf %15, %19 : vector<40x128xf32>
    %cst_12 = arith.constant 2.500000e-01 : f32
    %22 = vector.broadcast %cst_12 : f32 to vector<24x128xf32>
    %23 = arith.mulf %20, %22 : vector<24x128xf32>
    %c0_13 = arith.constant 0 : index
    %c0_14 = arith.constant 0 : index
    %24 = vector.load %arg5[%c0_13, %c0_14] : memref<24x128xf32, #tpu.memory_space<vmem>>, vector<24x128xf32>
    tpu.vector_store %arg5[%c0_13, %c0_14], %23 {strides = array<i32>} : memref<24x128xf32, #tpu.memory_space<vmem>>, vector<24x128xf32>,
    %cst_15 = arith.constant 2.500000e-01 : f32
    %25 = vector.broadcast %cst_15 : f32 to vector<40x128xf32>
    %26 = arith.mulf %21, %25 : vector<40x128xf32>
    %c0_16 = arith.constant 0 : index
    %c0_17 = arith.constant 0 : index
    %27 = vector.load %arg6[%c0_16, %c0_17] : memref<40x128xf32, #tpu.memory_space<vmem>>, vector<40x128xf32>
    tpu.vector_store %arg6[%c0_16, %c0_17], %26 {strides = array<i32>} : memref<40x128xf32, #tpu.memory_space<vmem>>, vector<40x128xf32>,
    return
  }
  func.func @transform_0(%arg0: i32) -> (i32, i32) {
    %c0_i32 = arith.constant 0 : i32
    %c0_i32_0 = arith.constant 0 : i32
    %c0_i32_1 = arith.constant 0 : i32
    return %c0_i32, %c0_i32_0 : i32, i32
  }
  func.func @transform_1(%arg0: i32) -> (i32, i32) {
    %c0_i32 = arith.constant 0 : i32
    %c0_i32_0 = arith.constant 0 : i32
    %c0_i32_1 = arith.constant 0 : i32
    return %c0_i32, %c0_i32_0 : i32, i32
  }
  func.func @transform_2(%arg0: i32) -> (i32, i32) {
    %c0_i32 = arith.constant 0 : i32
    %c0_i32_0 = arith.constant 0 : i32
    %c0_i32_1 = arith.constant 0 : i32
    return %c0_i32, %c0_i32_0 : i32, i32
  }
  func.func @transform_3(%arg0: i32) -> (i32, i32) {
    %c0_i32 = arith.constant 0 : i32
    %c0_i32_0 = arith.constant 0 : i32
    %c0_i32_1 = arith.constant 0 : i32
    return %c0_i32, %c0_i32_0 : i32, i32
  }
  func.func @transform_4(%arg0: i32) -> (i32, i32) {
    %c0_i32 = arith.constant 0 : i32
    %c0_i32_0 = arith.constant 0 : i32
    %c0_i32_1 = arith.constant 0 : i32
    return %c0_i32, %c0_i32_0 : i32, i32
  }
  func.func @transform_5(%arg0: i32) -> (i32, i32) {
    %c0_i32 = arith.constant 0 : i32
    %c0_i32_0 = arith.constant 0 : i32
    %c0_i32_1 = arith.constant 0 : i32
    return %c0_i32, %c0_i32_0 : i32, i32
  }
}

</mosaic_0001>

<bundles_post_ra>
// kernel: tpu_custom_call.1
= control target key start
LH: loop header
LB: loop body
LE: loop exit
PB: predicated region body
PF: predicated region fallthrough
CT: control target
= control target key end

     0   :  { %11 = vsyncpa [#allocation3], 0  ;;  %s1001_s0 = inlined_call_operand.hbm [shape: bf16[24,40], index: 0, kind: input, shape index: {}]   ;;  %s1002_s1 = inlined_call_operand.vmem [shape: bf16[40,24], index: 1, kind: input, shape index: {}]   ;;  %s1003_s2 = inlined_call_operand.hbm [shape: f32[24,128], index: 2, kind: input, shape index: {}]   ;;  %s1004_s3 = inlined_call_operand.vmem [shape: f32[40,128], index: 3, kind: input, shape index: {}]   ;;  %s1005_s4 = inlined_call_operand.hbm [shape: f32[24,128], index: 4, kind: output, shape index: {0}]   ;;  %s1006_s5 = inlined_call_operand.hbm [shape: f32[40,128], index: 5, kind: output, shape index: {1}]  }
   0x1   :  { %12 = vsyncpa [#allocation6], 0 }
   0x2   :  { %13 = vsyncpa [#allocation4], 0 }
   0x3   :  { %14 = vsyncpa [#allocation9], 0  ;;  %s766_s18 = smov [#allocation2]   ;;  %s670_s22 = scalar_lea.hbm %s1001_s0, 192 }
   0x4   :  { %s20_s19 = sshll.u32 %s766_s18, 4  ;;  %p671_p0 = scmp.ne.s32.totalorder %s1001_s0, %s670_s22  ;;  %s21_s19 = int_to_ptr.vmem [resolvable:$true] %s20_s19 }
   0x5   :  { %p674_p1 = scmp.lt.u32.totalorder %s670_s22, %s1001_s0 }
   0x7   :  { %p676_p2 = pnand %p674_p1, %p671_p0 }
   0x9   :  { %679 = shalt.err (!%p676_p2)
}
   0xa   :  { %s680_s27 = scalar_lea.vmem %s21_s19, 192  ;;  %p685_p4 = scmp.lt.s32.totalorder %s21_s19, %s21_s19 }
   0xb   :  { %p681_p3 = scmp.ne.s32.totalorder %s21_s19, %s680_s27  ;;  %p686_p5 = scmp.lt.s32.totalorder %s680_s27, %s680_s27 }
   0xd   :  { %p687_p6 = por %p686_p5, %p685_p4 }
   0xf   :  { %p688_p7 = pnand %p687_p6, %p681_p3 }
  0x11   :  { %691 = shalt.err (!%p688_p7)
}
  0x12   :  { %s767_s28 = smov 64   ;;  %s768_s29 = smov 4  }
  0x13   :  { %26 = dma.hbm_to_vmem [thread:$0]  %s1001_s0, 192, %s21_s19, [#allocation3], %s767_s28, %s767_s28, %s768_s29  }
  0x14   :  { %s769_s7 = smov [#allocation5]   ;;  %s692_s11 = scalar_lea.hbm %s1003_s2, 384 }
  0x15   :  { %s34_s8 = sshll.u32 %s769_s7, 4  ;;  %p693_p8 = scmp.ne.s32.totalorder %s1003_s2, %s692_s11  ;;  %s35_s8 = int_to_ptr.vmem [resolvable:$true] %s34_s8 }
  0x16   :  { %p696_p9 = scmp.lt.u32.totalorder %s692_s11, %s1003_s2 }
  0x18   :  { %p698_p10 = pnand %p696_p9, %p693_p8 }
  0x1a   :  { %701 = shalt.err (!%p698_p10)
}
  0x1b   :  { %s702_s16 = scalar_lea.vmem %s35_s8, 384  ;;  %p707_p12 = scmp.lt.s32.totalorder %s35_s8, %s35_s8 }
  0x1c   :  { %p703_p11 = scmp.ne.s32.totalorder %s35_s8, %s702_s16  ;;  %p708_p13 = scmp.lt.s32.totalorder %s702_s16, %s702_s16 }
  0x1e   :  { %p709_p0 = por %p708_p13, %p707_p12 }
  0x20   :  { %p710_p1 = pnand %p709_p0, %p703_p11 }
  0x22   :  { %713 = shalt.err (!%p710_p1)
}
  0x23   :  { %s770_s0 = smov 128   ;;  %s771_s17 = smov 8  }
  0x24   :  { %40 = dma.hbm_to_vmem [thread:$0]  %s1003_s2, 384, %s35_s8, [#allocation6], %s770_s0, %s770_s0, %s771_s17  }
  0x25   :  { %758 = dma.done.wait [#allocation3], 192  }
  0x26   :  { %759 = vsyncadd [#allocation3], 4294967104 }
  0x27   :  { %760 = dma.done.wait [#allocation6], 384  }
  0x28   :  { %761 = vsyncadd [#allocation6], 4294966912  ;;  %v772_v0 = vmov 0.0   ;;  %vm773_vm0 = vmmov 0   ;;  %v836_v1 = vld [vmem:[#allocation5] sm:$0xff]  ;;  %v838_v2 = vld [vmem:[#allocation5 + $0x8] sm:$0xff] }
  0x29   :  { %584 = vmatprep.subr.bf16.mxu1 %v772_v0  ;;  %588 = vmatprep.mubr.msk.bf16.mxu1 %vm773_vm0, %v772_v0  ;;  %v840_v3 = vld [vmem:[#allocation5 + $0x10] sm:$0xff]  ;;  %v66_v4 = vpack.c.bf16 %v838_v2, %v836_v1  ;;  %vm86_vm1 = vcmask 1043456   ;;  %v854_v7 = vld [vmem:[%s1004_s3 + $0x8] sm:$0xff]  ;;  %v859_v8 = vld [vmem:[%s1004_s3 + $0x10] sm:$0xff]  ;;  %vm79_vm2 = vcmask 326656   ;;  %vm151_vm3 = vcmask 195584  }
  0x2a   :  { %v67_v5 = vpack.c.bf16 %v840_v3, %v840_v3  ;;  %v849_v6 = vld [vmem:[%s1004_s3] sm:$0xff]  ;;  %v866_v10 = vld [vmem:[%s1004_s3 + $0x18] sm:$0xff]  ;;  %v891_v18 = vld [vmem:[#allocation2 + $0x8] ss:$0 sps:$4 sm:$0xff]  }
  0x2b   :  { %585 = vmatpush3.bf16.msra.mxu1 %v66_v4  ;;  %v68_v9 = vpack.c.bf16 %v854_v7, %v849_v6  ;;  %v69_v12 = vpack.c.bf16 %v866_v10, %v859_v8  ;;  %v875_v13 = vld [vmem:[%s1004_s3 + $0x20] sm:$0xff]  ;;  %v896_v19 = vld [vmem:[%s1002_s1 + $0x8] sm:$0xff]   ;;  %v908_v20 = vld [vmem:[%s1002_s1 + $0x10] ss:$0 sps:$4 sm:$0xff]  }
  0x2c   :  { %586 = vmatprep.subr.bf16.mxu1 %v772_v0  ;;  %v162_v11 = vsel %vm86_vm1, %v67_v5, 0  ;;  %v667_v14 = vld [vmem:[#allocation2] sm:$0xff]   ;;  %v70_v16 = vpack.c.bf16 %v875_v13, %v875_v13 }
  0x2d   :  { %574 = vmatprep.subr.bf16.mxu0 %v68_v9  ;;  %v880_v15 = vld [vmem:[%s1002_s1] sm:$0xff]   ;;  %580 = vmatprep.mubr.msk.bf16.mxu0 %vm79_vm2, %v667_v14  ;;  %s774_s1 = smov [#allocation7]  }
  0x2e   :  { %575 = vmatpush3.bf16.msra.mxu0 %v68_v9  ;;  %v88_v17 = vsel %vm86_vm1, %v70_v16, 0  ;;  %s495_s9 = sshll.u32 %s774_s1, 4  ;;  %s496_s9 = int_to_ptr.vmem [resolvable:$true] %s495_s9 }
  0x2f   :  { %587 = vmatpush3.bf16.msra.mxu1 %v162_v11  ;;  %576 = vmatprep.subr.bf16.mxu0 %v69_v12  ;;  %s714_s10 = scalar_lea.vmem %s496_s9, 384  ;;  %p719_p3 = scmp.lt.s32.totalorder %s496_s9, %s496_s9 }
  0x30   :  { %p715_p2 = scmp.ne.s32.totalorder %s496_s9, %s714_s10  ;;  %p720_p4 = scmp.lt.s32.totalorder %s714_s10, %s714_s10 }
  0x32   :  { %589 = vmatmul.mubr.msk.bf16.vlgmr.msra.gmra.mrb[0].mxu1 %vm151_vm3, %v880_v15  ;;  %577 = vmatpush3.bf16.msra.mxu0 %v69_v12  ;;  %p721_p5 = por %p720_p4, %p719_p3 }
  0x33   :  { %592 = vmatprep.mubr.msk.bf16.mxu1 %vm773_vm0, %v772_v0  ;;  %652 = vmatprep.subr.msk.bf16.mxu0 %vm86_vm1, %v70_v16 }
  0x34   :  { %p722_p6 = pnand %p721_p5, %p715_p2 }
  0x36   :  { %579 = vmatpush3.bf16.msra.mxu0 %v88_v17 }
  0x39   :  { %581 = vmatmul.mubr.msk.bf16.vlgmr.msra.gmra.mrb[0].mxu0 %vm79_vm2, %v891_v18 }
  0x3a   :  { %593 = vmatmul.mubr.msk.bf16.gmra.mrb[4].mxu1 %vm151_vm3, %v896_v19  ;;  %606 = vmatprep.mubr.msk.bf16.mxu0 %vm79_vm2, %v667_v14 }
  0x3b   :  { %596 = vmatprep.mubr.msk.bf16.mxu1 %vm773_vm0, %v772_v0 }
  0x42   :  { %597 = vmatmul.mubr.msk.bf16.gmra.mrb[8].mxu1 %vm151_vm3, %v908_v20 }
  0x43   :  { %632 = vmatprep.mubr.msk.bf16.mxu1 %vm79_vm2, %v667_v14 }
 0x105   :  { %v198_v21 = vpop.f32.mrb[0].mxu1 }
 0x106   :  { %v590_v22 = vpop.f32.mrb[1].mxu1  ;;  %v223_v55 = vadd.f32 %v198_v21, %v849_v6 }
 0x107   :  { %v201_v23 = vpop.f32.mrb[2].mxu1 }
 0x108   :  { %v230_v24 = vpack.c.bf16 %v201_v23, %v198_v21  ;;  %v591_v25 = vpop.f32.mrb[3].mxu1  ;;  %v224_v57 = vadd.f32 %v201_v23, %v854_v7 }
 0x10a   :  { %600 = vmatprep.subr.bf16.mxu0 %v230_v24 }
 0x10b   :  { %601 = vmatpush3.bf16.msra.mxu0 %v230_v24 }
 0x10c   :  { %v582_v26 = vpop.f32.mrb[0].mxu0 }
 0x10d   :  { %v206_v27 = vpop.f32.mrb[4].mxu1  ;;  %v124_v28 = vpop.f32.mrb[1].mxu0  ;;  %v229_v42 = vpack.c.bf16 %v582_v26, %v582_v26  ;;  %v222_v44 = vadd.f32 %v582_v26, %v840_v3 }
 0x10e   :  { %v594_v29 = vpop.f32.mrb[5].mxu1  ;;  %v583_v30 = vpop.f32.mrb[2].mxu0  ;;  %v220_v45 = vadd.f32 %v124_v28, %v836_v1  ;;  %v225_v1 = vadd.f32 %v206_v27, %v859_v8 }
 0x10f   :  { %v209_v31 = vpop.f32.mrb[6].mxu1  ;;  %v127_v32 = vpop.f32.mrb[3].mxu0  ;;  %v285_v43 = vsel %vm86_vm1, %v229_v42, 0 }
 0x110   :  { %v231_v33 = vpack.c.bf16 %v209_v31, %v206_v27  ;;  %v595_v34 = vpop.f32.mrb[7].mxu1  ;;  %v228_v35 = vpack.c.bf16 %v127_v32, %v124_v28  ;;  %v221_v49 = vadd.f32 %v127_v32, %v838_v2  ;;  %v226_v3 = vadd.f32 %v209_v31, %v866_v10 }
 0x112   :  { %602 = vmatprep.subr.bf16.mxu0 %v231_v33 }
 0x113   :  { %603 = vmatpush3.bf16.msra.mxu0 %v231_v33 }
 0x115   :  { %v214_v36 = vpop.f32.mrb[8].mxu1 }
 0x116   :  { %v232_v37 = vpack.c.bf16 %v214_v36, %v214_v36  ;;  %v598_v38 = vpop.f32.mrb[9].mxu1  ;;  %v227_v12 = vadd.f32 %v214_v36, %v875_v13 }
 0x117   :  { %v217_v39 = vpop.f32.mrb[10].mxu1 }
 0x118   :  { %v599_v40 = vpop.f32.mrb[11].mxu1  ;;  %653 = vmatprep.subr.msk.bf16.mxu0 %vm86_vm1, %v232_v37  ;;  %v234_v41 = vsel %vm86_vm1, %v232_v37, 0 }
 0x119   :  { %605 = vmatpush3.bf16.msra.mxu0 %v234_v41 }
 0x11a   :  { %610 = vmatprep.subr.bf16.mxu0 %v772_v0 }
 0x11c   :  { %607 = vmatmul.mubr.msk.bf16.vlgmr.msra.gmra.mrb[4].mxu0 %vm79_vm2, %v891_v18 }
 0x11d   :  { %611 = vmatpush3.bf16.msra.mxu0 %v228_v35  ;;  %614 = vmatprep.mubr.msk.bf16.mxu0 %vm773_vm0, %v772_v0 }
 0x11e   :  { %612 = vmatprep.subr.bf16.mxu0 %v772_v0 }
 0x121   :  { %613 = vmatpush3.bf16.msra.mxu0 %v285_v43 }
 0x124   :  { %615 = vmatmul.mubr.msk.bf16.vlgmr.msra.gmra.mrb[8].mxu0 %vm151_vm3, %v880_v15 }
 0x125   :  { %618 = vmatprep.mubr.msk.bf16.mxu0 %vm773_vm0, %v772_v0 }
 0x12c   :  { %619 = vmatmul.mubr.msk.bf16.gmra.mrb[12].mxu0 %vm151_vm3, %v896_v19 }
 0x12d   :  { %622 = vmatprep.mubr.msk.bf16.mxu0 %vm773_vm0, %v772_v0 }
 0x134   :  { %623 = vmatmul.mubr.msk.bf16.gmra.mrb[16].mxu0 %vm151_vm3, %v908_v20 }
 0x1ef   :  { %v608_v46 = vpop.f32.mrb[4].mxu0 }
 0x1f0   :  { %v345_v47 = vadd.f32 %v608_v46, %v222_v44  ;;  %v270_v48 = vpop.f32.mrb[5].mxu0  ;;  %v352_v23 = vpack.c.bf16 %v608_v46, %v608_v46 }
 0x1f1   :  { %v343_v50 = vadd.f32 %v270_v48, %v220_v45  ;;  %v609_v51 = vpop.f32.mrb[6].mxu0 }
 0x1f2   :  { %v273_v52 = vpop.f32.mrb[7].mxu0  ;;  %v408_v13 = vsel %vm86_vm1, %v352_v23, 0 }
 0x1f3   :  { %v344_v53 = vadd.f32 %v273_v52, %v221_v49  ;;  %v351_v54 = vpack.c.bf16 %v273_v52, %v270_v48 }
 0x1f7   :  { %v321_v56 = vpop.f32.mrb[8].mxu0 }
 0x1f8   :  { %v346_v58 = vadd.f32 %v321_v56, %v223_v55  ;;  %v616_v59 = vpop.f32.mrb[9].mxu0 }
 0x1f9   :  { %v324_v60 = vpop.f32.mrb[10].mxu0 }
 0x1fa   :  { %v937_v61 = vadd.f32 %v324_v60, %v224_v57  ;;  %v353_v62 = vpack.c.bf16 %v324_v60, %v321_v56  ;;  %v617_v63 = vpop.f32.mrb[11].mxu0 }
 0x1fc   :  { %626 = vmatprep.subr.bf16.mxu1 %v353_v62 }
 0x1fd   :  { %627 = vmatpush3.bf16.msra.mxu1 %v353_v62 }
 0x1ff   :  { %v329_v2 = vpop.f32.mrb[12].mxu0 }
 0x200   :  { %v941_v4 = vadd.f32 %v329_v2, %v225_v1  ;;  %v620_v5 = vpop.f32.mrb[13].mxu0 }
 0x201   :  { %v332_v6 = vpop.f32.mrb[14].mxu0 }
 0x202   :  { %v943_v9 = vadd.f32 %v332_v6, %v226_v3  ;;  %v354_v7 = vpack.c.bf16 %v332_v6, %v329_v2  ;;  %v621_v11 = vpop.f32.mrb[15].mxu0 }
 0x204   :  { %628 = vmatprep.subr.bf16.mxu1 %v354_v7 }
 0x205   :  { %629 = vmatpush3.bf16.msra.mxu1 %v354_v7 }
 0x207   :  { %v337_v14 = vpop.f32.mrb[16].mxu0 }
 0x208   :  { %v946_v16 = vadd.f32 %v337_v14, %v227_v12  ;;  %v355_v17 = vpack.c.bf16 %v337_v14, %v337_v14  ;;  %v624_v8 = vpop.f32.mrb[17].mxu0 }
 0x209   :  { %v340_v21 = vpop.f32.mrb[18].mxu0 }
 0x20a   :  { %v625_v22 = vpop.f32.mrb[19].mxu0  ;;  %654 = vmatprep.subr.msk.bf16.mxu1 %vm86_vm1, %v355_v17  ;;  %v357_v10 = vsel %vm86_vm1, %v355_v17, 0 }
 0x20b   :  { %631 = vmatpush3.bf16.msra.mxu1 %v357_v10 }
 0x20c   :  { %636 = vmatprep.subr.bf16.mxu1 %v772_v0 }
 0x20e   :  { %633 = vmatmul.mubr.msk.bf16.vlgmr.msra.gmra.mrb[12].mxu1 %vm79_vm2, %v891_v18 }
 0x20f   :  { %637 = vmatpush3.bf16.msra.mxu1 %v351_v54  ;;  %640 = vmatprep.mubr.msk.bf16.mxu1 %vm773_vm0, %v772_v0 }
 0x210   :  { %638 = vmatprep.subr.bf16.mxu1 %v772_v0 }
 0x213   :  { %639 = vmatpush3.bf16.msra.mxu1 %v408_v13 }
 0x216   :  { %641 = vmatmul.mubr.msk.bf16.vlgmr.msra.gmra.mrb[16].mxu1 %vm151_vm3, %v880_v15 }
 0x217   :  { %644 = vmatprep.mubr.msk.bf16.mxu1 %vm773_vm0, %v772_v0 }
 0x21e   :  { %645 = vmatmul.mubr.msk.bf16.gmra.mrb[20].mxu1 %vm151_vm3, %v896_v19 }
 0x21f   :  { %648 = vmatprep.mubr.msk.bf16.mxu1 %vm773_vm0, %v772_v0 }
 0x226   :  { %649 = vmatmul.mubr.msk.bf16.gmra.mrb[24].mxu1 %vm151_vm3, %v908_v20 }
 0x2e1   :  { %v634_v18 = vpop.f32.mrb[12].mxu1 }
 0x2e2   :  { %v468_v24 = vadd.f32 %v634_v18, %v345_v47  ;;  %v393_v25 = vpop.f32.mrb[13].mxu1 }
 0x2e3   :  { %v466_v26 = vadd.f32 %v393_v25, %v343_v50  ;;  %v635_v27 = vpop.f32.mrb[14].mxu1 }
 0x2e4   :  { %v476_v28 = vmul.f32 0.25, %v468_v24  ;;  %v396_v29 = vpop.f32.mrb[15].mxu1 }
 0x2e5   :  { %v474_v15 = vmul.f32 0.25, %v466_v26  ;;  %v467_v30 = vadd.f32 %v396_v29, %v344_v53 }
 0x2e6   :  { %479 = vst [vmem:[#allocation7 + $0x10] sm:$0xff] %v476_v28 }
 0x2e7   :  { %477 = vst [vmem:[#allocation7] sm:$0xff] %v474_v15  ;;  %v475_v19 = vmul.f32 0.25, %v467_v30 }
 0x2e9   :  { %478 = vst [vmem:[#allocation7 + $0x8] sm:$0xff] %v475_v19  ;;  %v444_v0 = vpop.f32.mrb[16].mxu1 }
 0x2ea   :  { %v469_v31 = vadd.f32 %v444_v0, %v346_v58  ;;  %v642_v32 = vpop.f32.mrb[17].mxu1 }
 0x2eb   :  { %725 = shalt.err (!%p722_p6)
}
 0x2ec   :  { %s726_s13 = scalar_lea.hbm %s1005_s4, 384 }
 0x2ed   :  { %p727_p7 = scmp.ne.s32.totalorder %s1005_s4, %s726_s13  ;;  %p730_p8 = scmp.lt.u32.totalorder %s726_s13, %s1005_s4 }
 0x2ef   :  { %p732_p9 = pnand %p730_p8, %p727_p7 }
 0x2f1   :  { %735 = shalt.err (!%p732_p9)
}
 0x2f2   :  { %501 = dma.vmem_to_hbm [thread:$0]  %s496_s9, 384, %s1005_s4, [#allocation4], %s770_s0, %s770_s0, %s771_s17   ;;  %v447_v20 = vpop.f32.mrb[18].mxu1  ;;  %v480_v33 = vmul.f32 0.25, %v469_v31 }
 0x2f3   :  { %v470_v34 = vadd.f32 %v447_v20, %v937_v61  ;;  %v643_v35 = vpop.f32.mrb[19].mxu1  ;;  %s775_s4 = smov [#allocation8]  }
 0x2f4   :  { %485 = vst [vmem:[#allocation8] sm:$0xff] %v480_v33  ;;  %v452_v37 = vpop.f32.mrb[20].mxu1  ;;  %s507_s20 = sshll.u32 %s775_s4, 4  ;;  %s508_s20 = int_to_ptr.vmem [resolvable:$true] %s507_s20 }
 0x2f5   :  { %v481_v36 = vmul.f32 0.25, %v470_v34  ;;  %v471_v38 = vadd.f32 %v452_v37, %v941_v4  ;;  %v646_v39 = vpop.f32.mrb[21].mxu1  ;;  %s736_s21 = scalar_lea.vmem %s508_s20, 640  ;;  %p741_p11 = scmp.lt.s32.totalorder %s508_s20, %s508_s20 }
 0x2f6   :  { %v455_v40 = vpop.f32.mrb[22].mxu1  ;;  %p737_p10 = scmp.ne.s32.totalorder %s508_s20, %s736_s21  ;;  %p742_p12 = scmp.lt.s32.totalorder %s736_s21, %s736_s21 }
 0x2f7   :  { %486 = vst [vmem:[#allocation8 + $0x8] sm:$0xff] %v481_v36  ;;  %v482_v41 = vmul.f32 0.25, %v471_v38  ;;  %v472_v42 = vadd.f32 %v455_v40, %v943_v9  ;;  %v647_v43 = vpop.f32.mrb[23].mxu1 }
 0x2f8   :  { %p743_p13 = por %p742_p12, %p741_p11 }
 0x2f9   :  { %487 = vst [vmem:[#allocation8 + $0x10] sm:$0xff] %v482_v41  ;;  %v483_v44 = vmul.f32 0.25, %v472_v42  ;;  %v460_v45 = vpop.f32.mrb[24].mxu1 }
 0x2fa   :  { %v473_v46 = vadd.f32 %v460_v45, %v946_v16  ;;  %v650_v47 = vpop.f32.mrb[25].mxu1  ;;  %p744_p0 = pnand %p743_p13, %p737_p10 }
 0x2fb   :  { %488 = vst [vmem:[#allocation8 + $0x18] sm:$0xff] %v483_v44  ;;  %v463_v48 = vpop.f32.mrb[26].mxu1 }
 0x2fc   :  { %v484_v49 = vmul.f32 0.25, %v473_v46  ;;  %v651_v50 = vpop.f32.mrb[27].mxu1 }
 0x2fe   :  { %489 = vst [vmem:[#allocation8 + $0x20] sm:$0xff] %v484_v49 }
 0x2ff   :  { %747 = shalt.err (!%p744_p0)
}
 0x300   :  { %s748_s24 = scalar_lea.hbm %s1006_s5, 640 }
 0x301   :  { %p749_p1 = scmp.ne.s32.totalorder %s1006_s5, %s748_s24  ;;  %p752_p2 = scmp.lt.u32.totalorder %s748_s24, %s1006_s5 }
 0x303   :  { %p754_p3 = pnand %p752_p2, %p749_p1 }
 0x305   :  { %757 = shalt.err (!%p754_p3)
}
 0x306   :  { %513 = dma.vmem_to_hbm [thread:$0]  %s508_s20, 640, %s1006_s5, [#allocation9], %s770_s0, %s770_s0, %s771_s17  }
 0x307   :  { %762 = dma.done.wait [#allocation4], 384  }
 0x308   :  { %763 = vsyncadd [#allocation4], 4294966912 }
 0x309   :  { %764 = dma.done.wait [#allocation9], 640  }
 0x30a   :  { %765 = vsyncadd [#allocation9], 4294966656 }
 0x30b   :  { %520 = vsyncpa [#allocation3], 1 }
 0x30c   :  { %521 = vsyncpa [#allocation6], 1 }
 0x30d   :  { %522 = vsyncpa [#allocation4], 1 }
 0x30e   :  { %523 = vsyncpa [#allocation9], 1 }

</bundles_post_ra>
